<compile_context>
chip_gen: v6e
topology: v6e:2x2x1
jax: 0.10.0
libtpu: 0.0.40
codegen_flags: <defaults>
</compile_context>

<pallas_src>
import jax
import jax.numpy as jnp
from jax.experimental import pallas as pl
from jax.experimental.pallas import tpu as pltpu


def _round_up(x, m):
    return ((x + m - 1) // m) * m


def _affine_kernel(z_ref, ss_ref, out_ref):
    # Pure per-row FMA: out = z * scale + shift.
    # ss_ref is (block_rows, 2) f32: column 0 = scale, column 1 = shift; broadcast on lanes.
    scale = ss_ref[:, 0:1]
    shift = ss_ref[:, 1:2]
    out_ref[...] = (z_ref[...] * scale + shift).astype(out_ref.dtype)


def _default_block_bytes():
    # Generation-specific default block size (v6e/v7x want ~2x bigger blocks; v5e keeps 2 MiB
    # so the double-buffered footprint stays well inside its 16 MiB default scoped VMEM).
    try:
        kind = jax.devices()[0].device_kind.lower()
    except Exception:
        kind = ""
    if "v6" in kind or "v7" in kind:
        return 4 * 1024 * 1024
    return 2 * 1024 * 1024


def actnorm_forward(z, log_scale, shift, sample=False, *, target_block_bytes=None,
                    donate_z=False):
    """z: (N, C, H, W); log_scale/shift: (1, C, 1, 1). Returns (z_out, ldj)."""
    N, C, H, W = z.shape
    HW = H * W
    rows = N * C
    itemsize = jnp.dtype(z.dtype).itemsize
    sublane = max(8, 32 // itemsize)          # 8 f32, 16 bf16, 32 int8/fp8
    if target_block_bytes is None:
        target_block_bytes = _default_block_bytes()

    ls = log_scale.reshape(C).astype(jnp.float32)
    sh = shift.reshape(C).astype(jnp.float32)

    # Fold both branches into one per-channel affine: z_out = z * scale_c + shift_c.
    if not sample:
        scale_c = jnp.exp(ls)                 # exp(ls) * z + shift
        shift_c = sh
        ldj_sign = 1.0
    else:
        inv = jnp.exp(-ls)                    # (z - shift)/exp(ls) = z*exp(-ls) - shift*exp(-ls)
        scale_c = inv
        shift_c = -sh * inv
        ldj_sign = -1.0

    # ldj is data-independent -> wrapper-side, not a kernel output.
    ldj = ldj_sign * float(HW) * jnp.sum(ls) * jnp.ones((N,), dtype=jnp.float32)

    # ---- lane-dense 2D layout: one (batch, channel) image per row, NO padding ----
    z2d = z.reshape(rows, HW)

    # Lane blocking: full (rounded-up) lane extent unless it exceeds 8192 lanes.
    lane_full = _round_up(HW, 128)
    block_lane = min(lane_full, 8192)

    # Row blocking: bounded only by the byte budget (dtype-aware), sublane-aligned.
    rows_budget = max(sublane,
                      (target_block_bytes // (block_lane * itemsize)) // sublane * sublane)
    block_rows = min(_round_up(rows, sublane), rows_budget)

    # Megacore: if the grid would be (1,1) but there are enough rows, split the row axis in
    # two so both v7x TensorCores get a block ("parallel" semantics shards them).
    if block_rows >= rows and block_lane >= lane_full and rows >= 2 * sublane:
        block_rows = _round_up(-(-rows // 2), sublane)

    grid = (pl.cdiv(rows, block_rows), pl.cdiv(HW, block_lane))

    # Packed per-row (scale, shift): row r -> channel r % C.
    ss_rows = jnp.stack([jnp.tile(scale_c, N), jnp.tile(shift_c, N)], axis=1)  # (rows, 2) f32

    # VMEM budget: in + out double-buffered + the narrow ss buffer (lane-padded to 128).
    block_bytes = block_rows * block_lane * itemsize
    ss_block_bytes = block_rows * 128 * 4
    vmem_limit = min(2 * 2 * block_bytes + 2 * ss_block_bytes + (4 << 20), 32 << 20)

    cost = pl.CostEstimate(
        flops=2 * rows * HW,
        transcendentals=0,
        bytes_accessed=2 * rows * HW * itemsize + rows * 2 * 4,
    )

    out2d = pl.pallas_call(
        _affine_kernel,
        out_shape=jax.ShapeDtypeStruct((rows, HW), z.dtype),
        grid_spec=pltpu.PrefetchScalarGridSpec(
            num_scalar_prefetch=0,
            grid=grid,
            in_specs=[
                pl.BlockSpec((block_rows, block_lane), lambda i, j: (i, j)),  # z tile
                pl.BlockSpec((block_rows, 2), lambda i, j: (i, 0)),           # packed scale|shift
            ],
            out_specs=pl.BlockSpec((block_rows, block_lane), lambda i, j: (i, j)),
        ),
        compiler_params=pltpu.CompilerParams(
            dimension_semantics=("parallel", "parallel"),
            vmem_limit_bytes=int(vmem_limit),
        ),
        cost_estimate=cost,
        input_output_aliases=({0: 0} if donate_z else {}),
    )(z2d, ss_rows)

    zout = out2d.reshape(N, C, H, W)
    return zout, ldj


def actnorm_init_params(z):
    """Matches ActNorm._initialize (one-time, data-dependent) in plain JAX.
    torch.std defaults to Bessel's correction -> ddof=1."""
    # TODO(synk): the is_initialized buffer / in-place parameter mutation is PyTorch module
    # state; here it is one-time setup glue outside the kernel.
    std = jnp.std(z, axis=(0, 2, 3), ddof=1)                         # (C,)
    mu = jnp.mean(z / std[None, :, None, None], axis=(0, 2, 3))      # (C,)
    log_scale = -jnp.log(std + 1e-6)
    shift = -mu
    C = z.shape[1]
    return log_scale.reshape(1, C, 1, 1), shift.reshape(1, C, 1, 1)


def actnorm_ref(z, log_scale, shift, sample=False):
    """Pure-JAX reference of the PyTorch forward (post-initialization)."""
    h, w = z.shape[-2:]
    if not sample:
        zout = jnp.exp(log_scale) * z + shift
        ldj = h * w * jnp.sum(log_scale) * jnp.ones(z.shape[0], dtype=jnp.float32)
    else:
        zout = (z - shift) / jnp.exp(log_scale)
        ldj = -h * w * jnp.sum(log_scale) * jnp.ones(z.shape[0], dtype=jnp.float32)
    return zout, ldj


def _check(N, C, H, W, key):
    z = jax.random.normal(key, (N, C, H, W), dtype=jnp.float32) * 2.0 + 0.5
    log_scale, shift = actnorm_init_params(z)

    z_out, ldj = actnorm_forward(z, log_scale, shift, sample=False)
    jax.block_until_ready((z_out, ldj))
    z_r, ldj_r = actnorm_ref(z, log_scale, shift, sample=False)
    assert z_out.shape == (N, C, H, W) and ldj.shape == (N,)
    assert jnp.allclose(z_out, z_r, atol=1e-5, rtol=1e-5)
    assert jnp.allclose(ldj, ldj_r, atol=1e-4, rtol=1e-5)

    z_rev, ldj_rev = actnorm_forward(z, log_scale, shift, sample=True)
    jax.block_until_ready((z_rev, ldj_rev))
    z_rr, ldj_rr = actnorm_ref(z, log_scale, shift, sample=True)
    assert jnp.allclose(z_rev, z_rr, atol=1e-5, rtol=1e-5)
    assert jnp.allclose(ldj_rev, ldj_rr, atol=1e-4, rtol=1e-5)


if __name__ == "__main__":
    key = jax.random.PRNGKey(0)
    k1, k2 = jax.random.split(key)

    # Primary small config from the module spec: grid (1, 1) (rows too few to split).
    _check(2, 4, 16, 16, k1)

    # Secondary config exercising ragged lane edge (15*17=255) and a multi-block parallel grid.
    _check(8, 96, 15, 17, k2)

    print("KERNEL_OK")
</pallas_src>

<mosaic_0001>
module attributes {stable_mosaic.version = 11 : i64} {
  func.func @_affine_kernel(%arg0: i32, %arg1: i32, %arg2: memref<8x256xf32, #tpu.memory_space<vmem>>, %arg3: memref<8x2xf32, #tpu.memory_space<vmem>>, %arg4: memref<8x256xf32, #tpu.memory_space<vmem>>) attributes {dimension_semantics = [#tpu.dimension_semantics<parallel>, #tpu.dimension_semantics<parallel>], iteration_bounds = array<i64: 1, 1>, scalar_prefetch = 0 : i64, scratch_operands = 0 : i64, tpu.core_type = #tpu.core_type<tc>, window_params = [{transform_indices = @transform_0, window_bounds = array<i64: 8, 256>}, {transform_indices = @transform_1, window_bounds = array<i64: 8, 2>}, {transform_indices = @transform_2, window_bounds = array<i64: 8, 256>}]} {
    %c0 = arith.constant 0 : index
    %c0_0 = arith.constant 0 : index
    %0 = vector.load %arg3[%c0, %c0_0] : memref<8x2xf32, #tpu.memory_space<vmem>>, vector<8x1xf32>
    %c0_1 = arith.constant 0 : index
    %c1 = arith.constant 1 : index
    %1 = vector.load %arg3[%c0_1, %c1] : memref<8x2xf32, #tpu.memory_space<vmem>>, vector<8x1xf32>
    %c0_2 = arith.constant 0 : index
    %c0_3 = arith.constant 0 : index
    %2 = vector.load %arg2[%c0_2, %c0_3] : memref<8x256xf32, #tpu.memory_space<vmem>>, vector<8x256xf32>
    %3 = vector.broadcast %0 : vector<8x1xf32> to vector<8x256xf32>
    %4 = arith.mulf %2, %3 : vector<8x256xf32>
    %5 = vector.broadcast %1 : vector<8x1xf32> to vector<8x256xf32>
    %6 = arith.addf %4, %5 : vector<8x256xf32>
    %c0_4 = arith.constant 0 : index
    %c0_5 = arith.constant 0 : index
    %7 = vector.load %arg4[%c0_4, %c0_5] : memref<8x256xf32, #tpu.memory_space<vmem>>, vector<8x256xf32>
    tpu.vector_store %arg4[%c0_4, %c0_5], %6 {strides = array<i32>} : memref<8x256xf32, #tpu.memory_space<vmem>>, vector<8x256xf32>,
    return
  }
  func.func @transform_0(%arg0: i32, %arg1: i32) -> (i32, i32) {
    %c0_i32 = arith.constant 0 : i32
    return %arg0, %arg1 : i32, i32
  }
  func.func @transform_1(%arg0: i32, %arg1: i32) -> (i32, i32) {
    %c0_i32 = arith.constant 0 : i32
    %c0_i32_0 = arith.constant 0 : i32
    return %arg0, %c0_i32 : i32, i32
  }
  func.func @transform_2(%arg0: i32, %arg1: i32) -> (i32, i32) {
    %c0_i32 = arith.constant 0 : i32
    return %arg0, %arg1 : i32, i32
  }
}

</mosaic_0001>

<bundles_post_ra>
// kernel: tpu_custom_call.1
= control target key start
LH: loop header
LB: loop body
LE: loop exit
PB: predicated region body
PF: predicated region fallthrough
CT: control target
= control target key end

     0   :  { %7 = vsyncpa [#allocation3], 0  ;;  %s135_s0 = inlined_call_operand.hbm [shape: f32[8,256], index: 0, kind: input, shape index: {}]   ;;  %s136_s1 = inlined_call_operand.vmem [shape: f32[8,2], index: 1, kind: input, shape index: {}]   ;;  %s137_s2 = inlined_call_operand.hbm [shape: f32[8,256], index: 2, kind: output, shape index: {}]  }
   0x1   :  { %8 = vsyncpa [#allocation4], 0  ;;  %s107_s9 = smov [#allocation2]  }
   0x2   :  { %s15_s10 = sshll.u32 %s107_s9, 4  ;;  %s16_s10 = int_to_ptr.vmem [resolvable:$true] %s15_s10 }
   0x3   :  { %s71_s11 = scalar_lea.vmem %s16_s10, 256  ;;  %p76_p1 = scmp.lt.s32.totalorder %s16_s10, %s16_s10 }
   0x4   :  { %p72_p0 = scmp.ne.s32.totalorder %s16_s10, %s71_s11  ;;  %p77_p2 = scmp.lt.s32.totalorder %s71_s11, %s71_s11 }
   0x6   :  { %p78_p3 = por %p77_p2, %p76_p1 }
   0x8   :  { %p79_p4 = pnand %p78_p3, %p72_p0 }
   0xa   :  { %82 = shalt.err (!%p79_p4)
}
   0xb   :  { %18 = dma.hbm_to_vmem [thread:$0]  %s135_s0, 256, %s16_s10, [#allocation3]  }
   0xc   :  { %103 = dma.done.wait [#allocation3], 256  }
   0xd   :  { %104 = vsyncadd [#allocation3], 4294967040  ;;  %v108_v0 = vmov 0   ;;  %v24_v1 = vld [vmem:[%s136_s1] sm:$0xff]  ;;  %v109_v2 = vmov 1   ;;  %v26_v5 = vld [vmem:[#allocation2 + $0x8] sm:$0xff] }
   0xe   :  { %61 = vset.pattern.permute.xlu0 %v108_v0  ;;  %v25_v4 = vld [vmem:[#allocation2] sm:$0xff]  ;;  %s110_s16 = smov [#allocation5]  }
   0xf   :  { %29 = vperm.xlu0 %61, %v24_v1   ;;  %s48_s17 = sshll.u32 %s110_s16, 4  ;;  %s49_s17 = int_to_ptr.vmem [resolvable:$true] %s48_s17 }
  0x10   :  { %s83_s0 = scalar_lea.vmem %s49_s17, 256  ;;  %p88_p6 = scmp.lt.s32.totalorder %s49_s17, %s49_s17 }
  0x11   :  { %p84_p5 = scmp.ne.s32.totalorder %s49_s17, %s83_s0  ;;  %p89_p7 = scmp.lt.s32.totalorder %s83_s0, %s83_s0 }
  0x13   :  { %62 = vset.pattern.permute.xlu0 %v109_v2  ;;  %p90_p8 = por %p89_p7, %p88_p6 }
  0x14   :  { %35 = vperm.xlu0 %62, %v24_v1  }
  0x15   :  { %p91_p9 = pnand %p90_p8, %p84_p5 }
  0x8a   :  { %v30_v3 = vpop.permute.xlu0 %29 }
  0x8b   :  { %v32_v6 = vmul.f32 %v30_v3, %v25_v4  ;;  %v33_v7 = vmul.f32 %v30_v3, %v26_v5 }
  0x8f   :  { %v36_v8 = vpop.permute.xlu0 %35 }
  0x90   :  { %v38_v9 = vadd.f32 %v36_v8, %v32_v6  ;;  %v39_v10 = vadd.f32 %v36_v8, %v33_v7 }
  0x92   :  { %40 = vst [vmem:[#allocation5] sm:$0xff] %v38_v9  ;;  %41 = vst [vmem:[#allocation5 + $0x8] sm:$0xff] %v39_v10 }
  0x93   :  { %94 = shalt.err (!%p91_p9)
}
  0x94   :  { %51 = dma.vmem_to_hbm [thread:$0]  %s49_s17, 256, %s137_s2, [#allocation4]  }
  0x95   :  { %105 = dma.done.wait [#allocation4], 256  }
  0x96   :  { %106 = vsyncadd [#allocation4], 4294967040 }
  0x97   :  { %55 = vsyncpa [#allocation3], 1 }
  0x98   :  { %56 = vsyncpa [#allocation4], 1 }

</bundles_post_ra>
